<compile_context>
chip_gen: v6e
topology: v6e:2x2x1
jax: 0.10.0
libtpu: 0.0.40
codegen_flags: <defaults>
</compile_context>

<pallas_src>
import math

import jax
import jax.numpy as jnp
from jax.experimental import pallas as pl
from jax.experimental.pallas import tpu as pltpu

_TWO_PI = 2.0 * math.pi


def _fourier_features_kernel(x_ref, wt_ref, cos_ref, sin_ref):
    # x_ref:   [tb, in_features]    batch tile of the input (native dtype)
    # wt_ref:  [in_features, half]  pre-transposed weight, resident every step
    # cos_ref: [tb, half]           lane-dense full-ref store
    # sin_ref: [tb, half]           lane-dense full-ref store
    f = _TWO_PI * jnp.dot(
        x_ref[...], wt_ref[...], preferred_element_type=jnp.float32
    )
    cos_ref[...] = jnp.cos(f).astype(cos_ref.dtype)
    sin_ref[...] = jnp.sin(f).astype(sin_ref.dtype)


def _round_up(a, m):
    return (a + m - 1) // m * m


def fourier_features(x, weight, *, block_batch=None):
    """x: [..., in_features], weight: [out_features//2, in_features] (torch layout)."""
    *lead, in_features = x.shape
    half, in_features_w = weight.shape
    assert in_features == in_features_w
    out_features = 2 * half
    out_dtype = x.dtype

    batch = 1
    for d in lead:
        batch *= d
    x2 = x.reshape(batch, in_features)

    in_itemsize = jnp.dtype(x.dtype).itemsize
    out_itemsize = jnp.dtype(out_dtype).itemsize

    if block_batch is None:
        # Double-buffered input tile + two double-buffered output tiles + the
        # f32 intermediate must sit comfortably inside the 32 MiB scoped-VMEM
        # default (and v7x's 64 MiB physical VMEM): budget ~20 MiB.
        row_bytes = (
            2 * in_features * in_itemsize        # input tile, double-buffered
            + 2 * out_features * out_itemsize    # cos+sin tiles, double-buffered
            + half * 4                           # f32 intermediate f
        )
        block_batch = min(1024, max(8, (20 << 20) // max(row_bytes, 1)), max(batch, 1))
        if batch > 8:
            # Guarantee >= 2 grid steps: enables DMA/compute pipelining and the
            # v7x 2-TensorCore split along the "parallel" batch axis.
            block_batch = min(block_batch, pl.cdiv(batch, 2))
    block_batch = max(8, _round_up(block_batch, 8))

    padded_batch = _round_up(max(batch, 1), block_batch)
    if padded_batch != batch:
        x2 = jnp.pad(x2, ((0, padded_batch - batch), (0, 0)))
    grid = (padded_batch // block_batch,)

    # One-time transpose in the wrapper; the kernel never transposes.
    wt = weight.T  # [in_features, half]

    cost = pl.CostEstimate(
        flops=2 * padded_batch * half * in_features,
        transcendentals=2 * padded_batch * half,
        bytes_accessed=(
            x2.size * in_itemsize
            + wt.size * jnp.dtype(wt.dtype).itemsize
            + padded_batch * out_features * out_itemsize
        ),
    )

    cos_out, sin_out = pl.pallas_call(
        _fourier_features_kernel,
        out_shape=(
            jax.ShapeDtypeStruct((padded_batch, half), out_dtype),
            jax.ShapeDtypeStruct((padded_batch, half), out_dtype),
        ),
        grid_spec=pltpu.PrefetchScalarGridSpec(
            num_scalar_prefetch=0,
            grid=grid,
            in_specs=[
                pl.BlockSpec((block_batch, in_features), lambda i: (i, 0)),
                pl.BlockSpec((in_features, half), lambda i: (0, 0)),
            ],
            out_specs=[
                pl.BlockSpec((block_batch, half), lambda i: (i, 0)),
                pl.BlockSpec((block_batch, half), lambda i: (i, 0)),
            ],
        ),
        compiler_params=pltpu.CompilerParams(
            dimension_semantics=("parallel",),
        ),
        cost_estimate=cost,
    )(x2, wt)

    out = jnp.concatenate([cos_out[:batch], sin_out[:batch]], axis=-1)
    return out.reshape(*lead, out_features)


def fourier_features_ref(x, weight):
    f = 2.0 * math.pi * (x.astype(jnp.float32) @ weight.astype(jnp.float32).T)
    return jnp.concatenate([jnp.cos(f), jnp.sin(f)], axis=-1).astype(x.dtype)


if __name__ == "__main__":
    key = jax.random.PRNGKey(0)
    k_x, k_w, k_x2 = jax.random.split(key, 3)

    batch = 8
    in_features = 4
    out_features = 32  # must be even; weight has out_features // 2 rows
    std = 1.0

    x = jax.random.normal(k_x, (batch, in_features), dtype=jnp.float32)
    # Deterministic "torch.randn * std" analogue for the parameter.
    weight = (
        jax.random.normal(k_w, (out_features // 2, in_features), dtype=jnp.float32)
        * std
    )

    out = jax.block_until_ready(fourier_features(x, weight))
    ref = fourier_features_ref(x, weight)
    assert out.shape == (batch, out_features)
    assert jnp.allclose(out, ref, atol=1e-5, rtol=1e-5)

    # Ragged batch: exercises padding + multi-step grid (pipelined, parallel).
    x_big = jax.random.normal(k_x2, (20, in_features), dtype=jnp.float32)
    out_big = jax.block_until_ready(fourier_features(x_big, weight))
    ref_big = fourier_features_ref(x_big, weight)
    assert out_big.shape == (20, out_features)
    assert jnp.allclose(out_big, ref_big, atol=1e-5, rtol=1e-5)

    print("KERNEL_OK")
</pallas_src>

<mosaic_0001>
module attributes {stable_mosaic.version = 11 : i64} {
  func.func @_fourier_features_kernel(%arg0: i32, %arg1: memref<8x4xf32, #tpu.memory_space<vmem>>, %arg2: memref<4x16xf32, #tpu.memory_space<vmem>>, %arg3: memref<8x16xf32, #tpu.memory_space<vmem>>, %arg4: memref<8x16xf32, #tpu.memory_space<vmem>>) attributes {dimension_semantics = [#tpu.dimension_semantics<parallel>], iteration_bounds = array<i64: 1>, scalar_prefetch = 0 : i64, scratch_operands = 0 : i64, tpu.core_type = #tpu.core_type<tc>, window_params = [{transform_indices = @transform_0, window_bounds = array<i64: 8, 4>}, {pipeline_mode = #tpu.pipeline_mode<synchronous>, transform_indices = @transform_1, window_bounds = array<i64: 4, 16>}, {transform_indices = @transform_2, window_bounds = array<i64: 8, 16>}, {transform_indices = @transform_3, window_bounds = array<i64: 8, 16>}]} {
    %c0 = arith.constant 0 : index
    %c0_0 = arith.constant 0 : index
    %0 = vector.load %arg1[%c0, %c0_0] : memref<8x4xf32, #tpu.memory_space<vmem>>, vector<8x4xf32>
    %c0_1 = arith.constant 0 : index
    %c0_2 = arith.constant 0 : index
    %1 = vector.load %arg2[%c0_1, %c0_2] : memref<4x16xf32, #tpu.memory_space<vmem>>, vector<4x16xf32>
    %cst = arith.constant dense<0.000000e+00> : vector<8x16xf32>
    %2 = tpu.matmul %0, %1, %cst {dimension_numbers = #tpu.dot_dimension_numbers<[1], [0], [0], [1], [0, 0, 1, 1], [], []>} : vector<8x4xf32>, vector<4x16xf32>, vector<8x16xf32> -> vector<8x16xf32>
    %cst_3 = arith.constant 6.28318548 : f32
    %3 = vector.broadcast %cst_3 : f32 to vector<8x16xf32>
    %4 = arith.mulf %3, %2 : vector<8x16xf32>
    %5 = math.cos %4 : vector<8x16xf32>
    %c0_4 = arith.constant 0 : index
    %c0_5 = arith.constant 0 : index
    %6 = vector.load %arg3[%c0_4, %c0_5] : memref<8x16xf32, #tpu.memory_space<vmem>>, vector<8x16xf32>
    tpu.vector_store %arg3[%c0_4, %c0_5], %5 {strides = array<i32>} : memref<8x16xf32, #tpu.memory_space<vmem>>, vector<8x16xf32>,
    %7 = math.sin %4 : vector<8x16xf32>
    %c0_6 = arith.constant 0 : index
    %c0_7 = arith.constant 0 : index
    %8 = vector.load %arg4[%c0_6, %c0_7] : memref<8x16xf32, #tpu.memory_space<vmem>>, vector<8x16xf32>
    tpu.vector_store %arg4[%c0_6, %c0_7], %7 {strides = array<i32>} : memref<8x16xf32, #tpu.memory_space<vmem>>, vector<8x16xf32>,
    return
  }
  func.func @transform_0(%arg0: i32) -> (i32, i32) {
    %c0_i32 = arith.constant 0 : i32
    %c0_i32_0 = arith.constant 0 : i32
    return %arg0, %c0_i32 : i32, i32
  }
  func.func @transform_1(%arg0: i32) -> (i32, i32) {
    %c0_i32 = arith.constant 0 : i32
    %c0_i32_0 = arith.constant 0 : i32
    %c0_i32_1 = arith.constant 0 : i32
    return %c0_i32, %c0_i32_0 : i32, i32
  }
  func.func @transform_2(%arg0: i32) -> (i32, i32) {
    %c0_i32 = arith.constant 0 : i32
    %c0_i32_0 = arith.constant 0 : i32
    return %arg0, %c0_i32 : i32, i32
  }
  func.func @transform_3(%arg0: i32) -> (i32, i32) {
    %c0_i32 = arith.constant 0 : i32
    %c0_i32_0 = arith.constant 0 : i32
    return %arg0, %c0_i32 : i32, i32
  }
}

</mosaic_0001>

<bundles_post_ra>
// kernel: tpu_custom_call.1
= control target key start
LH: loop header
LB: loop body
LE: loop exit
PB: predicated region body
PF: predicated region fallthrough
CT: control target
= control target key end

     0   :  { %9 = vsyncpa [#allocation3], 0  ;;  %vm21_vm0 = vcmask 1043456   ;;  %v413_v2 = vmov 0.0   ;;  %vm414_vm1 = vmmov 0   ;;  %vm17_vm2 = vcmask 31744   ;;  %s478_s0 = inlined_call_operand.vmem [shape: f32[8,4], index: 0, kind: input, shape index: {}]   ;;  %s479_s1 = inlined_call_operand.vmem [shape: f32[4,16], index: 1, kind: input, shape index: {}]   ;;  %s480_s2 = inlined_call_operand.hbm [shape: f32[8,16], index: 2, kind: output, shape index: {0}]   ;;  %s481_s3 = inlined_call_operand.hbm [shape: f32[8,16], index: 3, kind: output, shape index: {1}]  }
   0x1   :  { %v16_v0 = vld [vmem:[%s479_s1] sm:$0xf]  ;;  %346 = vmatprep.subr.mxu0 %v413_v2  ;;  %348 = vmatprep.mubr.msk.f32.mxu0 %vm414_vm1, %v413_v2 }
   0x2   :  { %v15_v1 = vld [vmem:[%s478_s0] sm:$0xff] }
   0x3   :  { %10 = vsyncpa [#allocation5], 0  ;;  %347 = vmatpush3.msk.msra.mxu0 %vm21_vm0, %v16_v0  ;;  %v415_v16 = vmov 683565275   ;;  %v416_v18 = vmov 2475754826  }
   0x4   :  { %349 = vmatmul.mubr.msk.f32.vlgmr.msra.gmra.mxu0 %vm17_vm2, %v15_v1  ;;  %v417_v21 = vmov 2131351028   ;;  %v418_v24 = vmov 2102212464   ;;  %v419_v27 = vmov 920167782  }
   0x5   :  { %v420_v30 = vmov 1326507024   ;;  %vm199_vm13 = vcmask 130048   ;;  %s421_s0 = smov [#allocation2]   ;;  %s422_s16 = smov [#allocation4]  }
   0x6   :  { %s312_s1 = sshll.u32 %s421_s0, 4  ;;  %s322_s17 = sshll.u32 %s422_s16, 4  ;;  %s313_s1 = int_to_ptr.vmem [resolvable:$true] %s312_s1  ;;  %s323_s17 = int_to_ptr.vmem [resolvable:$true] %s322_s17 }
   0x7   :  { %s369_s18 = scalar_lea.vmem %s313_s1, 128  ;;  %p374_p1 = scmp.lt.s32.totalorder %s313_s1, %s313_s1 }
   0x8   :  { %p370_p0 = scmp.ne.s32.totalorder %s313_s1, %s369_s18  ;;  %p375_p2 = scmp.lt.s32.totalorder %s369_s18, %s369_s18 }
   0xa   :  { %p376_p3 = por %p375_p2, %p374_p1 }
   0xc   :  { %p377_p4 = pnand %p376_p3, %p370_p0 }
  0xc4   :  { %v91_v3 = vpop.f32.mrf.mxu0 }
  0xc5   :  { %v449_v4 = vmul.f32 6.2831855, %v91_v3 }
  0xc6   :  { %v350_v5 = vpop.f32.mrf.mxu0 }
  0xc7   :  { %v99_v6 = vand.u32 2139095040, %v449_v4  ;;  %v96_v10 = vand.u32 2147483647, %v449_v4  ;;  %vm98_vm10 = vcmp.lt.s32.totalorder %v449_v4, 0 }
  0xc9   :  { %v100_v7 = vshrl.u32 %v99_v6, 23  ;;  %v103_v13 = vand.u32 8388607, %v96_v10  ;;  %vm97_vm11 = vcmp.le.f32.partialorder %v96_v10, 0.7853982 }
  0xcb   :  { %v336_v8 = vadd.s32 4294967169, %v100_v7  ;;  %v104_v32 = vor.u32 8388608, %v103_v13 }
  0xcd   :  { %v106_v9 = vadd.s32 1, %v336_v8  ;;  %v144_v46 = vshll.u32 %v104_v32, 8 }
  0xcf   :  { %vm107_vm3 = vcmp.gt.s32.totalorder %v106_v9, 0 }
  0xd0   :  { %v108_v11 = vsel %vm107_vm3, %v106_v9, 0  ;;  %vm188_vm3 = vweird.f32 %v449_v4 }
  0xd1   :  { %v110_v12 = vand.u32 31, %v108_v11  ;;  %v109_v15 = vshrl.u32 %v108_v11, 5 }
  0xd3   :  { %v111_v14 = vsub.s32 32, %v110_v12  ;;  %v113_v17 = vshll.u32 %v415_v16, %v110_v12  ;;  %v116_v19 = vshll.u32 %v416_v18, %v110_v12  ;;  %v119_v23 = vshll.u32 %v417_v21, %v110_v12 }
  0xd4   :  { %v122_v26 = vshll.u32 %v418_v24, %v110_v12  ;;  %v125_v29 = vshll.u32 %v419_v27, %v110_v12  ;;  %vm128_vm4 = vcmp.lt.s32.totalorder %v109_v15, 1  ;;  %vm131_vm5 = vcmp.lt.s32.totalorder %v109_v15, 4 }
  0xd5   :  { %v114_v20 = vshrl.u32 %v416_v18, %v111_v14  ;;  %v117_v22 = vshrl.u32 %v417_v21, %v111_v14  ;;  %v120_v25 = vshrl.u32 %v418_v24, %v111_v14  ;;  %v123_v28 = vshrl.u32 %v419_v27, %v111_v14 }
  0xd6   :  { %v126_v31 = vshrl.u32 %v420_v30, %v111_v14  ;;  %v112_v41 = vshrl.u32 %v415_v16, %v111_v14  ;;  %vm130_vm6 = vcmp.lt.s32.totalorder %v109_v15, 3  ;;  %vm129_vm7 = vcmp.lt.s32.totalorder %v109_v15, 2 }
  0xd7   :  { %v115_v33 = vor.u32 %v114_v20, %v113_v17  ;;  %v118_v34 = vor.u32 %v117_v22, %v116_v19  ;;  %v121_v35 = vor.u32 %v120_v25, %v119_v23  ;;  %v124_v36 = vor.u32 %v123_v28, %v122_v26 }
  0xd8   :  { %v127_v37 = vor.u32 %v126_v31, %v125_v29 }
  0xd9   :  { %v133_v38 = vsel %vm131_vm5, %v121_v35, 2102212464  ;;  %v136_v39 = vsel %vm128_vm4, %v115_v33, %v118_v34  ;;  %v140_v40 = vsel %vm128_vm4, %v118_v34, %v121_v35  ;;  %v137_v42 = vsel %vm131_vm5, %v124_v36, 920167782 }
  0xda   :  { %v141_v43 = vsel %vm131_vm5, %v127_v37, 1326507024  ;;  %v138_v44 = vsel %vm130_vm6, %v121_v35, %v137_v42  ;;  %v132_v47 = vsel %vm128_vm4, %v112_v41, %v115_v33  ;;  %v134_v48 = vsel %vm130_vm6, %v118_v34, %v133_v38 }
  0xdb   :  { %v142_v45 = vsel %vm130_vm6, %v124_v36, %v141_v43  ;;  %v139_v49 = vsel %vm129_vm7, %v136_v39, %v138_v44  ;;  %v135_v55 = vsel %vm129_vm7, %v132_v47, %v134_v48 }
  0xdc   :  { %v143_v50 = vsel %vm129_vm7, %v140_v40, %v142_v45  ;;  %v458_v53 = vmul.u32.u64.low %v144_v46, %v139_v49  ;;  %v459_v54 = vmul.u32.u64.high %v144_v46, %v139_v49, %v458_v53  ;;  %v151_v57 = vmul.u32 %v144_v46, %v135_v55 }
  0xdd   :  { %v455_v51 = vmul.u32.u64.low %v144_v46, %v143_v50  ;;  %v456_v52 = vmul.u32.u64.high %v144_v46, %v143_v50, %v455_v51 }
  0xde   :  { %v154_v56 = vadd.s32 1, %v459_v54 }
  0xdf   :  { %vm153_vm8 = vc.u32 %v456_v52, %v458_v53  ;;  %v152_v6 = vadd.s32 %v458_v53, %v456_v52 }
  0xe0   :  { %v155_v58 = vsel %vm153_vm8, %v154_v56, %v459_v54 }
  0xe1   :  { %v156_v59 = vadd.s32 %v155_v58, %v151_v57 }
  0xe3   :  { %v157_v60 = vadd.s32 536870912, %v156_v59 }
  0xe5   :  { %v158_v61 = vshrl.u32 %v157_v60, 30 }
  0xe7   :  { %v159_v62 = vshll.u32 %v158_v61, 30  ;;  %v182_v20 = vsub.s32 4, %v158_v61 }
  0xe9   :  { %v160_v63 = vsub.s32 %v156_v59, %v159_v62  ;;  %v183_v23 = vsel %vm98_vm10, %v182_v20, %v158_v61 }
  0xea   :  { %v185_v24 = vsel %vm97_vm11, 0, %v183_v23 }
  0xeb   :  { %v162_v0 = vsub.s32 0, %v160_v63  ;;  %v294_v25 = vadd.s32 3, %v185_v24  ;;  %v189_v26 = vand.u32 3, %v185_v24 }
  0xed   :  { %v337_v1 = vmin.u32 %v162_v0, %v160_v63  ;;  %v295_v27 = vand.u32 3, %v294_v25  ;;  %vm194_vm12 = vcmp.eq.s32.totalorder %v189_v26, 2  ;;  %vm191_vm15 = vcmp.eq.s32.totalorder %v189_v26, 0 }
  0xee   :  { %vm190_vm1 = vcmp.lt.s32.totalorder %v189_v26, 2 }
  0xef   :  { %v164_v2 = vclz %v337_v1  ;;  %vm300_vm14 = vcmp.eq.s32.totalorder %v295_v27, 2  ;;  %vm297_vm0 = vcmp.eq.s32.totalorder %v295_v27, 0  ;;  %vm296_vm2 = vcmp.lt.s32.totalorder %v295_v27, 2 }
  0xf1   :  { %v338_v3 = vadd.s32 4294967294, %v164_v2 }
  0xf3   :  { %vm339_vm9 = vcmp.lt.s32.totalorder %v338_v3, 0 }
  0xf4   :  { %v167_v5 = vsel %vm339_vm9, 0, %v338_v3 }
  0xf5   :  { %v168_v7 = vsub.s32 32, %v167_v5  ;;  %v172_v8 = vsub.s32 4294967266, %v167_v5  ;;  %v169_v9 = vshll.u32 %v160_v63, %v167_v5 }
  0xf7   :  { %v170_v11 = vshrl.u32 %v152_v6, %v168_v7  ;;  %v173_v12 = vadd.s32 127, %v172_v8 }
  0xf9   :  { %v171_v13 = vor.u32 %v170_v11, %v169_v9  ;;  %v174_v14 = vshll.u32 %v173_v12, 23 }
  0xfb   :  { %v175_v15 = vor.u32 4788187, %v174_v14  ;;  %v178_v17 = vcvt.s32.f32 %v171_v13 }
  0xfd   :  { %v176_v16 = vand.u32 2147483647, %v175_v15 }
  0xff   :  { %v179_v18 = vmul.f32 %v178_v17, %v176_v16 }
 0x101   :  { %v180_v19 = vxor.u32 2147483648, %v179_v18 }
 0x103   :  { %v181_v21 = vsel %vm98_vm10, %v180_v19, %v179_v18 }
 0x104   :  { %v184_v22 = vsel %vm97_vm11, %v449_v4, %v181_v21 }
 0x105   :  { %365 = vcosq.f32 %v184_v22 }
 0x106   :  { %367 = vsinq.f32 %v184_v22 }
 0x112   :  { %v366_v28 = vpop.eup %365 }
 0x113   :  { %v368_v29 = vpop.eup %367  ;;  %v195_v30 = vxor.u32 2147483648, %v366_v28 }
 0x114   :  { %v192_v31 = vxor.u32 2147483648, %v368_v29 }
 0x115   :  { %v196_v10 = vsel %vm194_vm12, %v195_v30, %v368_v29  ;;  %v302_v32 = vsel %vm300_vm14, %v195_v30, %v368_v29 }
 0x116   :  { %v193_v33 = vsel %vm191_vm15, %v366_v28, %v192_v31  ;;  %v299_v34 = vsel %vm297_vm0, %v366_v28, %v192_v31 }
 0x117   :  { %v197_v35 = vsel %vm190_vm1, %v193_v33, %v196_v10  ;;  %v303_v36 = vsel %vm296_vm2, %v299_v34, %v302_v32 }
 0x118   :  { %v198_v37 = vsel %vm188_vm3, nan, %v197_v35  ;;  %v304_v38 = vsel %vm188_vm3, nan, %v303_v36 }
 0x119   :  { %200 = vst.msk [vmem:[#allocation2] sm:$0xff] %vm199_vm13, %v198_v37  ;;  %305 = vst.msk [vmem:[#allocation4] sm:$0xff] %vm199_vm13, %v304_v38 }
 0x11a   :  { %380 = shalt.err (!%p377_p4)
}
 0x11b   :  { %315 = dma.vmem_to_hbm [thread:$0]  %s313_s1, 128, %s480_s2, [#allocation3]  }
 0x11c   :  { %s389_s21 = scalar_lea.vmem %s323_s17, 128  ;;  %p394_p6 = scmp.lt.s32.totalorder %s323_s17, %s323_s17 }
 0x11d   :  { %p390_p5 = scmp.ne.s32.totalorder %s323_s17, %s389_s21  ;;  %p395_p7 = scmp.lt.s32.totalorder %s389_s21, %s389_s21 }
 0x11f   :  { %p396_p8 = por %p395_p7, %p394_p6 }
 0x121   :  { %p397_p9 = pnand %p396_p8, %p390_p5 }
 0x123   :  { %400 = shalt.err (!%p397_p9)
}
 0x124   :  { %325 = dma.vmem_to_hbm [thread:$0]  %s323_s17, 128, %s481_s3, [#allocation5]  }
 0x125   :  { %409 = dma.done.wait [#allocation3], 128  }
 0x126   :  { %410 = vsyncadd [#allocation3], 4294967168 }
 0x127   :  { %411 = dma.done.wait [#allocation5], 128  }
 0x128   :  { %412 = vsyncadd [#allocation5], 4294967168 }
 0x129   :  { %332 = vsyncpa [#allocation3], 1 }
 0x12a   :  { %333 = vsyncpa [#allocation5], 1 }

</bundles_post_ra>
